<compile_context>
chip_gen: v7x
topology: tpu7x:2x2x1
jax: 0.10.0
libtpu: 0.0.40
codegen_flags: <defaults>
</compile_context>

<pallas_src>
import functools
import itertools as it
import random

import jax
import jax.numpy as jnp
import numpy as np
from jax import lax
from jax.experimental import pallas as pl
from jax.experimental.pallas import tpu as pltpu


# ----------------------------------------------------------------------------
# Host-side sampler (equivalent to Sampler(method='random').randomsampling)
# ----------------------------------------------------------------------------
def random_sampling(batch_np, labels_np, seed=0):
    """Finds all valid (a, p, n) triplets and randomly selects len(batch) of them."""
    rng = random.Random(seed)
    unique_classes = np.unique(labels_np)
    indices = np.arange(len(batch_np))
    class_dict = {c: indices[labels_np == c] for c in unique_classes}
    sampled = [list(it.product([x], [x], [y for y in unique_classes if x != y]))
               for x in unique_classes]
    sampled = [t for grp in sampled for t in grp]
    sampled = [[t for t in list(it.product(*[class_dict[j] for j in trip])) if t[0] != t[1]]
               for trip in sampled]
    sampled = [t for grp in sampled for t in grp]
    sampled = rng.sample(sampled, batch_np.shape[0])
    return np.array(sampled, dtype=np.int32)  # (T, 3), T == BS


# ----------------------------------------------------------------------------
# Pallas kernel: in-kernel gather + fused hinge, one partial sum per tile
# ----------------------------------------------------------------------------
def _triplet_tile_kernel(ia_ref, ip_ref, in_ref, batch_ref, part_ref,
                         *, margin, n_triplets, tile):
    step = pl.program_id(0)
    base = step * tile

    def body(r, acc):
        t = base + r
        valid = t < n_triplets                      # tail-tile mask
        tc = jnp.where(valid, t, 0)                 # keep index reads in-bounds
        ia = ia_ref[tc]                             # scalar reads from SMEM
        ip = ip_ref[tc]
        ineg = in_ref[tc]
        # Dynamic row gather from the VMEM-resident batch.
        a = batch_ref[pl.ds(ia, 1), :].astype(jnp.float32)
        p = batch_ref[pl.ds(ip, 1), :].astype(jnp.float32)
        n = batch_ref[pl.ds(ineg, 1), :].astype(jnp.float32)
        dp = a - p
        dn = a - n
        # Fused: a single cross-lane reduction instead of two.
        d = jnp.sum(dp * dp - dn * dn)
        h = jnp.maximum(d + margin, 0.0)
        return acc + jnp.where(valid, h, jnp.float32(0.0))

    partial = lax.fori_loop(0, tile, body, jnp.float32(0.0))
    # Lane-dense partial-sum block for this tile; wrapper reads [g, 0, 0].
    part_ref[...] = jnp.broadcast_to(partial, part_ref.shape)


def triplet_loss_pallas(batch, triplets, margin=1.0, tile=None):
    """batch: (BS, D) f32/bf16 embeddings; triplets: (T, 3) int index array."""
    BS, D = batch.shape
    trip_np = np.asarray(triplets)
    T = int(trip_np.shape[0])
    if tile is None:
        tile = min(T, 128)
    tile = max(1, min(int(tile), T))
    G = pl.cdiv(T, tile)

    ia = jnp.asarray(trip_np[:, 0], dtype=jnp.int32)
    ip = jnp.asarray(trip_np[:, 1], dtype=jnp.int32)
    ineg = jnp.asarray(trip_np[:, 2], dtype=jnp.int32)

    kernel = functools.partial(_triplet_tile_kernel, margin=float(margin),
                               n_triplets=T, tile=tile)

    itemsize = jnp.dtype(batch.dtype).itemsize
    # Resident batch is double-buffered by the pipeline; keep explicit headroom
    # but stay under v7x's 64 MiB physical VMEM (v5e default scoped is 16 MiB).
    vmem_limit = int(min(60 * 1024 * 1024,
                         max(16 * 1024 * 1024, 2 * BS * D * itemsize + (4 << 20))))

    partials = pl.pallas_call(
        kernel,
        out_shape=jax.ShapeDtypeStruct((G, 8, 128), jnp.float32),
        grid_spec=pltpu.PrefetchScalarGridSpec(
            num_scalar_prefetch=3,                 # ia, ip, ineg live in SMEM
            grid=(G,),
            in_specs=[
                # Whole batch resident in VMEM (constant block index => one DMA).
                pl.BlockSpec((BS, D), lambda g, ia_r, ip_r, in_r: (0, 0)),
            ],
            out_specs=pl.BlockSpec((1, 8, 128),
                                   lambda g, ia_r, ip_r, in_r: (g, 0, 0)),
        ),
        compiler_params=pltpu.CompilerParams(
            dimension_semantics=("parallel",),     # tiles are independent (v7x 2-TC)
            vmem_limit_bytes=vmem_limit,
        ),
        cost_estimate=pl.CostEstimate(
            flops=5 * T * D + 4 * T,
            transcendentals=0,
            bytes_accessed=BS * D * itemsize + 3 * T * 4 + G * 8 * 128 * 4,
        ),
    )(ia, ip, ineg, batch)

    return jnp.sum(partials[:, 0, 0]) * (1.0 / float(T))


# ----------------------------------------------------------------------------
# Full module-equivalent forward
# ----------------------------------------------------------------------------
def triplet_loss_forward(batch, labels_np, margin=1.0, sampler_seed=0, tile=None):
    """batch: jnp array (BS, D); labels_np: np.ndarray (BS,)."""
    batch_np = np.asarray(batch)
    triplets = random_sampling(batch_np, np.asarray(labels_np), seed=sampler_seed)
    loss = triplet_loss_pallas(batch, triplets, margin=margin, tile=tile)
    return loss, triplets


if __name__ == "__main__":
    # Small, deterministic example: BS=8 embeddings of dim 128, 2 classes.
    BS, D = 8, 128
    key = jax.random.PRNGKey(0)
    batch = jax.random.normal(key, (BS, D), dtype=jnp.float32)
    labels = np.array([0, 0, 0, 0, 1, 1, 1, 1], dtype=np.int64)

    margin = 1.0
    loss, triplets = triplet_loss_forward(batch, labels, margin=margin, sampler_seed=0)
    loss = jax.block_until_ready(loss)

    # Pure NumPy reference of triplet_distance + mean (same sampled triplets).
    b = np.asarray(batch, dtype=np.float32)
    ref_losses = []
    for a_i, p_i, n_i in triplets:
        dpos = np.sum((b[a_i] - b[p_i]) ** 2)
        dneg = np.sum((b[a_i] - b[n_i]) ** 2)
        ref_losses.append(max(dpos - dneg + margin, 0.0))
    ref = float(np.mean(np.array(ref_losses, dtype=np.float32)))

    np.testing.assert_allclose(float(loss), ref, rtol=1e-5, atol=1e-5)
    print("KERNEL_OK")
</pallas_src>

<mosaic_0001>
module attributes {stable_mosaic.version = 11 : i64} {
  func.func @_triplet_tile_kernel(%arg0: i32, %arg1: memref<8xi32, #tpu.memory_space<smem>>, %arg2: memref<8xi32, #tpu.memory_space<smem>>, %arg3: memref<8xi32, #tpu.memory_space<smem>>, %arg4: memref<8x128xf32, #tpu.memory_space<vmem>>, %arg5: memref<1x8x128xf32, #tpu.memory_space<vmem>>) attributes {dimension_semantics = [#tpu.dimension_semantics<parallel>], iteration_bounds = array<i64: 1>, scalar_prefetch = 3 : i64, scratch_operands = 0 : i64, tpu.core_type = #tpu.core_type<tc>, window_params = [{pipeline_mode = #tpu.pipeline_mode<synchronous>, transform_indices = @transform_0, window_bounds = array<i64: 8, 128>}, {transform_indices = @transform_1, window_bounds = array<i64: 1, 8, 128>}]} {
    %c8_i32 = arith.constant 8 : i32
    %0 = arith.muli %arg0, %c8_i32 : i32
    %cst = arith.constant 0.000000e+00 : f32
    %c0_i32 = arith.constant 0 : i32
    %c8_i32_0 = arith.constant 8 : i32
    %1 = arith.addi %c0_i32, %c8_i32_0 : i32
    %c1_i32 = arith.constant 1 : i32
    %2 = scf.for %arg6 = %c0_i32 to %1 step %c1_i32 iter_args(%arg7 = %cst) -> (f32)  : i32 {
      %5 = arith.addi %0, %arg6 : i32
      %c8_i32_4 = arith.constant 8 : i32
      %6 = arith.cmpi slt, %5, %c8_i32_4 : i32
      %c0_i32_5 = arith.constant 0 : i32
      %7 = arith.select %6, %5, %c0_i32_5 : i32
      %8 = arith.index_cast %7 : i32 to index
      %9 = memref.load %arg1[%8] : memref<8xi32, #tpu.memory_space<smem>>
      %10 = arith.index_cast %7 : i32 to index
      %11 = memref.load %arg2[%10] : memref<8xi32, #tpu.memory_space<smem>>
      %12 = arith.index_cast %7 : i32 to index
      %13 = memref.load %arg3[%12] : memref<8xi32, #tpu.memory_space<smem>>
      %14 = arith.index_cast %9 : i32 to index
      %c0_6 = arith.constant 0 : index
      %15 = vector.load %arg4[%14, %c0_6] : memref<8x128xf32, #tpu.memory_space<vmem>>, vector<1x128xf32>
      %16 = arith.index_cast %11 : i32 to index
      %c0_7 = arith.constant 0 : index
      %17 = vector.load %arg4[%16, %c0_7] : memref<8x128xf32, #tpu.memory_space<vmem>>, vector<1x128xf32>
      %18 = arith.index_cast %13 : i32 to index
      %c0_8 = arith.constant 0 : index
      %19 = vector.load %arg4[%18, %c0_8] : memref<8x128xf32, #tpu.memory_space<vmem>>, vector<1x128xf32>
      %20 = arith.subf %15, %17 : vector<1x128xf32>
      %21 = arith.subf %15, %19 : vector<1x128xf32>
      %22 = arith.mulf %20, %20 : vector<1x128xf32>
      %23 = arith.mulf %21, %21 : vector<1x128xf32>
      %24 = arith.subf %22, %23 : vector<1x128xf32>
      %25 = vector.shape_cast %24 : vector<1x128xf32> to vector<1x1x128xf32>
      %cst_9 = arith.constant dense<0.000000e+00> : vector<1xf32>
      %26 = vector.multi_reduction <add>, %25, %cst_9 [1, 2] : vector<1x1x128xf32> to vector<1xf32>
      %27 = vector.shape_cast %26 : vector<1xf32> to vector<1x1x1xf32>
      %28 = vector.extract %27[0, 0, 0] : f32 from vector<1x1x1xf32>
      %cst_10 = arith.constant 1.000000e+00 : f32
      %29 = arith.addf %28, %cst_10 : f32
      %cst_11 = arith.constant 0.000000e+00 : f32
      %30 = arith.maximumf %29, %cst_11 : f32
      %cst_12 = arith.constant 0.000000e+00 : f32
      %31 = arith.select %6, %30, %cst_12 : f32
      %32 = arith.addf %arg7, %31 : f32
      scf.yield %32 : f32
    }
    %c8_i32_1 = arith.constant 8 : i32
    %3 = vector.broadcast %2 : f32 to vector<1x8x128xf32>
    %c0 = arith.constant 0 : index
    %c0_2 = arith.constant 0 : index
    %c0_3 = arith.constant 0 : index
    %4 = vector.load %arg5[%c0, %c0_2, %c0_3] : memref<1x8x128xf32, #tpu.memory_space<vmem>>, vector<1x8x128xf32>
    tpu.vector_store %arg5[%c0, %c0_2, %c0_3], %3 {strides = array<i32>} : memref<1x8x128xf32, #tpu.memory_space<vmem>>, vector<1x8x128xf32>,
    return
  }
  func.func @transform_0(%arg0: i32, %arg1: memref<8xi32, #tpu.memory_space<smem>>, %arg2: memref<8xi32, #tpu.memory_space<smem>>, %arg3: memref<8xi32, #tpu.memory_space<smem>>) -> (i32, i32) {
    %c0_i32 = arith.constant 0 : i32
    %c0_i32_0 = arith.constant 0 : i32
    %c0_i32_1 = arith.constant 0 : i32
    return %c0_i32, %c0_i32_0 : i32, i32
  }
  func.func @transform_1(%arg0: i32, %arg1: memref<8xi32, #tpu.memory_space<smem>>, %arg2: memref<8xi32, #tpu.memory_space<smem>>, %arg3: memref<8xi32, #tpu.memory_space<smem>>) -> (i32, i32, i32) {
    %c0_i32 = arith.constant 0 : i32
    %c0_i32_0 = arith.constant 0 : i32
    %c0_i32_1 = arith.constant 0 : i32
    return %arg0, %c0_i32, %c0_i32_0 : i32, i32, i32
  }
}

</mosaic_0001>

<bundles_post_ra>
// kernel: tpu_custom_call.1
= control target key start
LH: loop header
LB: loop body
LE: loop exit
PB: predicated region body
PF: predicated region fallthrough
CT: control target
= control target key end

     0   :  { %s281_s0 = inlined_call_operand.hbm [shape: s32[8], index: 0, kind: input, shape index: {}]   ;;  %s282_s3 = inlined_call_operand.vmem [shape: f32[8,128], index: 3, kind: input, shape index: {}]   ;;  %s283_s4 = inlined_call_operand.hbm [shape: f32[1,8,128], index: 4, kind: output, shape index: {}]   ;;  %s284_s1 = inlined_call_operand.vmem [shape: s32[8], index: 1, kind: input, shape index: {}]   ;;  %s285_s2 = inlined_call_operand.vmem [shape: s32[8], index: 2, kind: input, shape index: {}]  }
   0x1   :  { %s114_s17 = scalar_lea.hbm %s281_s0, 16 }
   0x2   :  { %p115_p0 = scmp.ne.s32.totalorder %s281_s0, %s114_s17  ;;  %p118_p1 = scmp.lt.u32.totalorder %s114_s17, %s281_s0 }
   0x4   :  { %p120_p2 = pnand %p118_p1, %p115_p0 }
   0x6   :  { %123 = shalt.err (!%p120_p2)  }
   0x7   :  { %s190_s22 = smov [#allocation3]   ;;  %s11_s27 = sshll.u32 %s284_s1, 4  ;;  %s12_s27 = int_to_ptr.vmem [resolvable:$true] %s11_s27 }
   0x8   :  { %10 = dma.hbm_to_smem %s281_s0, 16, %s190_s22, [#allocation2] }
   0x9   :  { %s15_s30 = sshll.u32 %s285_s2, 4  ;;  %s124_s5 = scalar_lea.vmem %s12_s27, 16  ;;  %s16_s30 = int_to_ptr.vmem [resolvable:$true] %s15_s30 }
   0xa   :  { %p125_p3 = scmp.ne.s32.totalorder %s12_s27, %s124_s5  ;;  %p129_p4 = scmp.lt.s32.totalorder %s12_s27, %s12_s27 }
   0xb   :  { %p130_p5 = scmp.lt.s32.totalorder %s124_s5, %s124_s5 }
   0xd   :  { %p131_p6 = por %p130_p5, %p129_p4 }
   0xf   :  { %p132_p7 = pnand %p131_p6, %p125_p3 }
  0x11   :  { %135 = shalt.err (!%p132_p7)  }
  0x12   :  { %s191_s6 = smov [#allocation4]   ;;  %s136_s0 = scalar_lea.vmem %s16_s30, 16 }
  0x13   :  { %14 = dma.vmem_to_smem %s12_s27, 16, %s191_s6, [#allocation2] }
  0x14   :  { %p137_p8 = scmp.ne.s32.totalorder %s16_s30, %s136_s0  ;;  %p141_p9 = scmp.lt.s32.totalorder %s16_s30, %s16_s30 }
  0x15   :  { %p142_p10 = scmp.lt.s32.totalorder %s136_s0, %s136_s0 }
  0x17   :  { %p143_p11 = por %p142_p10, %p141_p9 }
  0x19   :  { %p144_p12 = pnand %p143_p11, %p137_p8 }
  0x1b   :  { %147 = shalt.err (!%p144_p12)  }
  0x1c   :  { %s192_s1 = smov [#allocation5]  }
  0x1d   :  { %18 = dma.vmem_to_smem %s16_s30, 16, %s192_s1, [#allocation2] }
  0x1e   :  { %178 = dma.done.wait [#allocation2], 48 }
  0x1f   :  { %179 = vsyncadd [#allocation2], 4294967248 }
  0x20   :  { %20 = sfence }
  0x21   :  { %21 = vsyncpa [#allocation7], 0  ;;  %s238_s2 = smov 0.0   ;;  %s240_s7 = smov 0  }
  0x22 LB: > { %p33_p13 = scmp.lt.s32.totalorder %s188_s7, 8  ;;  %vm49_vm0 = vcmask 1040384   ;;  %s193_s23 = smov 0.0   ;;  %s188_s7 = sphi %s240_s7, %s30_s7   ;;  %s184_s2 = sphi %s238_s2, %s286_s2  }
  0x24   : > { %s34_s8 = scalar_select %p33_p13, %s188_s7, 0 }
  0x25   : > { %s30_s7 = sadd.s32 1, %s188_s7  }
  0x26   : > { %s35_s9 = sld [smem:[#allocation3 + %s34_s8]]  ;;  %p27_p0 = scmp.ge.s32.totalorder %s30_s7, 8  }
  0x27   : > { %s36_s10 = sld [smem:[#allocation4 + %s34_s8]]  ;;  %s194_s26 = smov (%p27_p0), [#allocation6]  }
  0x28   : > { %s37_s11 = sld [smem:[#allocation5 + %s34_s8]]  ;;  %s72_s27 = sshll.u32 (%p27_p0), %s194_s26, 4  ;;  %s73_s27 = int_to_ptr.vmem [resolvable:$true] %s72_s27 }
  0x29   :  { %s148_s28 = scalar_lea.vmem (%p27_p0), %s73_s27, 128  ;;  %p153_p2 = scmp.lt.s32.totalorder (%p27_p0), %s73_s27, %s73_s27 }
  0x2a   :  { %p149_p1 = scmp.ne.s32.totalorder (%p27_p0), %s73_s27, %s148_s28  ;;  %p154_p3 = scmp.lt.s32.totalorder (%p27_p0), %s148_s28, %s148_s28 }
  0x2c   : > { %s38_s14 = scalar_lea.vmem %s282_s3, %s35_s9  ;;  %p155_p4 = por (%p27_p0), %p154_p3, %p153_p2 }
  0x2d   : > { %s40_s17 = scalar_lea.vmem %s282_s3, %s36_s10  ;;  %v39_v0 = vld [vmem:[%s38_s14] sm:$0x1] }
  0x2e   : > { %v41_v1 = vld [vmem:[%s40_s17] sm:$0x1]  ;;  %s42_s20 = scalar_lea.vmem %s282_s3, %s37_s11  ;;  %p156_p5 = pnand (%p27_p0), %p155_p4, %p149_p1 }
  0x2f   : > { %v43_v2 = vld [vmem:[%s42_s20] sm:$0x1]  ;;  %v44_v3 = vsub.f32 %v39_v0, %v41_v1 }
  0x30   : > { %v45_v4 = vsub.f32 %v39_v0, %v43_v2 }
  0x31   : > { %v46_v5 = vmul.f32 %v44_v3, %v44_v3 }
  0x32   : > { %v47_v6 = vmul.f32 %v45_v4, %v45_v4 }
  0x34   : > { %v48_v7 = vsub.f32 %v46_v5, %v47_v6 }
  0x36   : > { %v50_v8 = vsel %vm49_vm0, %v48_v7, 0.0 }
  0x37   : > { %51 = vadd.xlane.f32.xlu0 %v50_v8 }
  0xc4   : > { %v52_v9 = vpop.xlane.xlu0 %51 }
  0xc5   : > { %v53_v10 = vrot.slane %v52_v9, 4 }
  0xc7   : > { %v54_v11 = vadd.f32 %v53_v10, %v52_v9 }
  0xc9   : > { %v55_v12 = vrot.slane %v54_v11, 2 }
  0xcb   : > { %v56_v13 = vadd.f32 %v55_v12, %v54_v11 }
  0xcd   : > { %v57_v14 = vrot.slane %v56_v13, 1 }
  0xcf   : > { %v58_v15 = vadd.f32 %v57_v14, %v56_v13 }
  0xd1   : > { %91 = vpush %v58_v15 }
 0x102   : > { %s92_s21 = spop %91 }
 0x103   : > { %s60_s22 = sadd.f32 1.0, %s92_s21  ;;  %29 = sbr.rel (!%p27_p0) target bundleno = 34 (0x22), region = 34 }
 0x105   : > { %s61_s24 = smax.f32 %s193_s23, %s60_s22 }
 0x106   : > { %s288_s24 = smov (!%p33_p13, %s61_s24), 0.0 }
 0x107   : > { %s63_s25 = sadd.f32 %s184_s2, %s288_s24  }
 0x109   : > { %s286_s2 = smov %s63_s25  ;;  %v64_v16 = vstv (%p27_p0), %s63_s25 }
 0x10a   :  { %65 = vst [vmem:[#allocation6] sm:$0xff] %v64_v16 }
 0x10b   :  { %159 = shalt.err (!%p156_p5)
}
 0x10c   :  { %s160_s5 = scalar_lea.hbm %s283_s4, 128 }
 0x10d   :  { %p161_p6 = scmp.ne.s32.totalorder %s283_s4, %s160_s5  ;;  %p164_p7 = scmp.lt.u32.totalorder %s160_s5, %s283_s4 }
 0x10f   :  { %p166_p8 = pnand %p164_p7, %p161_p6 }
 0x111   :  { %169 = shalt.err (!%p166_p8)
}
 0x112   :  { %75 = dma.vmem_to_hbm [thread:$0]  %s73_s27, 128, %s283_s4, [#allocation7]  }
 0x113   :  { %180 = dma.done.wait [#allocation7], 128  }
 0x114   :  { %181 = vsyncadd [#allocation7], 4294967168 }
 0x115   :  { %79 = vsyncpa [#allocation7], 1 }

</bundles_post_ra>
